<compile_context>
chip_gen: v5e
topology: v5e:2x2
jax: 0.10.0
libtpu: 0.0.40
codegen_flags: <defaults>
</compile_context>

<pallas_src>
import jax
import jax.numpy as jnp
from jax.experimental import pallas as pl
from jax.experimental.pallas import tpu as pltpu


# ----------------------------------------------------------------------------
# Layer-size derivation: exact re-implementation of mlp_vae.find_num_neurons
# ----------------------------------------------------------------------------
def find_num_neurons(input_size, middle_size, num_layers, is_enc, rho=1):
    if is_enc:
        a1, an, n = input_size, middle_size, num_layers
    else:
        a1, an, n = middle_size, input_size, num_layers
    d = (an - a1) / n ** rho
    num_in_list = [int(a1) + i * d for i in range(0, n + 1)]
    pair_list = [num_in_list[i:i + 2] for i in range(0, n)]
    # nn.Linear(int(num[0]), int(num[1]))
    return [(int(p[0]), int(p[1])) for p in pair_list]


def _round_up(x, m):
    return (x + m - 1) // m * m


# ----------------------------------------------------------------------------
# Host-side (one-time) algebraic fusion + packing of the Linear chains
# ----------------------------------------------------------------------------
def compose_affine(params):
    """params: list of (W (in,out), b (1,out)). Returns fused (W, b)."""
    W, b = params[0]
    for w2, b2 in params[1:]:
        W = W @ w2
        b = b @ w2 + b2
    return W, b


def prepare_mlp_vae_params(enc_params, dec_params):
    """One-time parameter prep (hoisted out of the per-call path).

    Fuses each activation-free Linear chain into a single affine map, pads to
    lane-dense widths, and packs (W ‖ b) into two bf16 slabs:
      enc_slab: (d_in_p + 8, low_p)  rows [0:d_in]=W_enc, row d_in_p = b_enc
      dec_slab: (low_p + 8, out_p)   rows [0:low ]=W_dec, row low_p  = b_dec
    Keeping the slabs separate avoids padding the narrow encoder to out_p.
    """
    W_enc, b_enc = compose_affine(enc_params)
    W_dec, b_dec = compose_affine(dec_params)
    d_in, low_dim = W_enc.shape
    out_dim = W_dec.shape[1]

    d_in_p = _round_up(d_in, 128)
    low_p = _round_up(low_dim, 128)
    out_p = _round_up(out_dim, 128)

    enc_slab = jnp.zeros((d_in_p + 8, low_p), jnp.float32)
    enc_slab = enc_slab.at[:d_in, :low_dim].set(W_enc)
    enc_slab = enc_slab.at[d_in_p, :low_dim].set(b_enc[0])

    dec_slab = jnp.zeros((low_p + 8, out_p), jnp.float32)
    dec_slab = dec_slab.at[:low_dim, :out_dim].set(W_dec)
    dec_slab = dec_slab.at[low_p, :out_dim].set(b_dec[0])

    meta = dict(d_in=d_in, low_dim=low_dim, out_dim=out_dim,
                d_in_p=d_in_p, low_p=low_p, out_p=out_p)
    return enc_slab.astype(jnp.bfloat16), dec_slab.astype(jnp.bfloat16), meta


# ----------------------------------------------------------------------------
# Pallas kernel: two bf16 MXU matmuls (f32 accumulation) per batch tile
# ----------------------------------------------------------------------------
def _make_mlp_vae_kernel(d_in_p, low_p, out_p):
    def kernel(x_ref, enc_ref, dec_ref, low_ref, recon_ref):
        x = x_ref[...]                                           # (tb, d_in_p) bf16
        w_enc = enc_ref[0:d_in_p, :]                             # (d_in_p, low_p) bf16
        b_enc = enc_ref[d_in_p:d_in_p + 1, :].astype(jnp.float32)
        w_dec = dec_ref[0:low_p, :]                              # (low_p, out_p) bf16
        b_dec = dec_ref[low_p:low_p + 1, :].astype(jnp.float32)

        low = jnp.dot(x, w_enc, preferred_element_type=jnp.float32) + b_enc
        low_ref[...] = low
        recon_ref[...] = (
            jnp.dot(low.astype(jnp.bfloat16), w_dec,
                    preferred_element_type=jnp.float32) + b_dec
        )

    return kernel


# ----------------------------------------------------------------------------
# Batch-tile selection: VMEM-budget aware, >= 2 grid steps when possible
# ----------------------------------------------------------------------------
_VMEM_TILE_BUDGET = 32 << 20   # conservative; fits v7x 64 MiB/core with headroom


def _pick_tb(B, d_in_p, low_p, out_p, tb_max):
    B8 = _round_up(max(B, 1), 8)
    # Per-batch-row VMEM: double-buffered bf16 x tile + f32 low/recon tiles.
    per_row = 2 * (2 * d_in_p + 4 * low_p + 4 * out_p)
    slab_bytes = 2 * ((d_in_p + 8) * low_p + (low_p + 8) * out_p)  # bf16, 1x buffered
    cap_vmem = max(8, ((_VMEM_TILE_BUDGET - slab_bytes) // max(per_row, 1)) // 8 * 8)
    # Keep >= 2 grid steps when the batch allows it (v7x megacore sharding).
    cap_two_steps = _round_up(pl.cdiv(B8, 2), 8) if B8 >= 16 else B8
    tb = min(tb_max, B8, cap_two_steps, cap_vmem)
    return max(8, (tb // 8) * 8)


# ----------------------------------------------------------------------------
# Forward pass
# ----------------------------------------------------------------------------
def mlp_vae_forward(x, enc_slab, dec_slab, meta, *, tb=512):
    """x: (B, input_size) f32.  enc_slab/dec_slab/meta from prepare_mlp_vae_params."""
    B, d_in = x.shape
    assert d_in == meta["d_in"]
    d_in_p, low_p, out_p = meta["d_in_p"], meta["low_p"], meta["out_p"]
    low_dim, out_dim = meta["low_dim"], meta["out_dim"]

    tb = _pick_tb(B, d_in_p, low_p, out_p, tb)
    b_pad = _round_up(B, tb)

    # Only materialize a padded copy of x when shapes actually need it.
    if b_pad == B and d_in_p == d_in:
        x_p = x.astype(jnp.bfloat16)
    else:
        x_p = (jnp.zeros((b_pad, d_in_p), jnp.bfloat16)
               .at[:B, :d_in].set(x.astype(jnp.bfloat16)))

    grid = (b_pad // tb,)
    kernel = _make_mlp_vae_kernel(d_in_p, low_p, out_p)

    enc_rows = d_in_p + 8
    dec_rows = low_p + 8
    flops = 2 * b_pad * (d_in_p * low_p + low_p * out_p)
    bytes_accessed = (2 * b_pad * d_in_p                              # x (bf16)
                      + 2 * (enc_rows * low_p + dec_rows * out_p)     # slabs (bf16)
                      + 4 * b_pad * (low_p + out_p))                  # outputs (f32)

    # VMEM: double-buffered activation tiles + single-buffered weight slabs.
    est_vmem = (2 * tb * (2 * d_in_p + 4 * low_p + 4 * out_p)
                + 2 * (enc_rows * low_p + dec_rows * out_p))
    vmem_limit = int(min(56 << 20, max(24 << 20, est_vmem + (8 << 20))))

    # NOTE: for very large input_size (out_p >~ 4K) on v7x, a second grid axis
    # tiling out_p (slicing W_dec / recon) would be needed to stay under 64 MiB.
    low_pad, recon_pad = pl.pallas_call(
        kernel,
        out_shape=(
            jax.ShapeDtypeStruct((b_pad, low_p), jnp.float32),
            jax.ShapeDtypeStruct((b_pad, out_p), jnp.float32),
        ),
        grid=grid,
        in_specs=[
            pl.BlockSpec((tb, d_in_p), lambda i: (i, 0)),
            # Constant-index weight slabs: single-buffered (never re-DMA'd).
            pl.BlockSpec((enc_rows, low_p), lambda i: (0, 0),
                         pipeline_mode=pl.Buffered(1)),
            pl.BlockSpec((dec_rows, out_p), lambda i: (0, 0),
                         pipeline_mode=pl.Buffered(1)),
        ],
        out_specs=(
            pl.BlockSpec((tb, low_p), lambda i: (i, 0)),
            pl.BlockSpec((tb, out_p), lambda i: (i, 0)),
        ),
        compiler_params=pltpu.CompilerParams(
            dimension_semantics=("parallel",),
            vmem_limit_bytes=vmem_limit,
        ),
        cost_estimate=pl.CostEstimate(
            flops=flops, transcendentals=0, bytes_accessed=bytes_accessed
        ),
    )(x_p, enc_slab, dec_slab)

    # slice padded outputs back to logical shapes (outside the kernel)
    return low_pad[:B, :low_dim], recon_pad[:B, :out_dim]


# ----------------------------------------------------------------------------
# Deterministic parameter init (synthetic; mimics nn.Linear shapes)
# ----------------------------------------------------------------------------
def init_linear(key, fan_in, fan_out):
    kw, kb = jax.random.split(key)
    bound = 1.0 / jnp.sqrt(jnp.float32(fan_in))
    # PyTorch Linear stores W as (out, in); we pre-transpose to (in, out).
    w = jax.random.uniform(kw, (fan_in, fan_out), jnp.float32, -bound, bound)
    b = jax.random.uniform(kb, (1, fan_out), jnp.float32, -bound, bound)
    return w, b


def reference_forward(x, enc_params, dec_params):
    h = x
    for w, b in enc_params:
        h = h @ w + b
    low = h
    for w, b in dec_params:
        h = h @ w + b
    return low, h


if __name__ == "__main__":
    # Small config consistent with the module defaults.
    input_size, middle_size, num_layers_in = 32, 8, 3
    sym = True
    num_layers_out = num_layers_in if sym else 3

    enc_pairs = find_num_neurons(input_size, middle_size, num_layers_in, is_enc=True)
    dec_pairs = find_num_neurons(input_size, middle_size, num_layers_out, is_enc=False)

    key = jax.random.PRNGKey(0)
    keys = jax.random.split(key, len(enc_pairs) + len(dec_pairs) + 2)

    enc_params = [init_linear(keys[i], fi, fo) for i, (fi, fo) in enumerate(enc_pairs)]
    dec_params = [
        init_linear(keys[len(enc_pairs) + i], fi, fo)
        for i, (fi, fo) in enumerate(dec_pairs)
    ]

    # One-time host-side parameter prep (fusion + padding + bf16 slab packing).
    enc_slab, dec_slab, meta = prepare_mlp_vae_params(enc_params, dec_params)
    jax.block_until_ready((enc_slab, dec_slab))

    # --- case 1: tiny batch (grid of 1) -------------------------------------
    batch = 2
    x = jax.random.normal(keys[-2], (batch, input_size), jnp.float32)
    low, recon = mlp_vae_forward(x, enc_slab, dec_slab, meta)
    jax.block_until_ready((low, recon))

    low_ref, recon_ref = reference_forward(x, enc_params, dec_params)
    assert low.shape == (batch, enc_pairs[-1][1])
    assert recon.shape == (batch, dec_pairs[-1][1])
    # bf16 MXU operands with f32 accumulation: loosened tolerance vs f32 ref.
    assert jnp.allclose(low, low_ref, atol=5e-2, rtol=5e-2)
    assert jnp.allclose(recon, recon_ref, atol=5e-2, rtol=5e-2)

    # --- case 2: moderate batch (>= 2 grid steps, padded tiles) --------------
    batch2 = 64
    x2 = jax.random.normal(keys[-1], (batch2, input_size), jnp.float32)
    low2, recon2 = mlp_vae_forward(x2, enc_slab, dec_slab, meta)
    jax.block_until_ready((low2, recon2))

    low2_ref, recon2_ref = reference_forward(x2, enc_params, dec_params)
    assert low2.shape == (batch2, enc_pairs[-1][1])
    assert recon2.shape == (batch2, dec_pairs[-1][1])
    assert jnp.allclose(low2, low2_ref, atol=5e-2, rtol=5e-2)
    assert jnp.allclose(recon2, recon2_ref, atol=5e-2, rtol=5e-2)

    print("KERNEL_OK")
</pallas_src>

<mosaic_0001>
module attributes {stable_mosaic.version = 11 : i64} {
  func.func @kernel(%arg0: i32, %arg1: memref<8x128xbf16, #tpu.memory_space<vmem>>, %arg2: memref<136x128xbf16, #tpu.memory_space<vmem>>, %arg3: memref<136x128xbf16, #tpu.memory_space<vmem>>, %arg4: memref<8x128xf32, #tpu.memory_space<vmem>>, %arg5: memref<8x128xf32, #tpu.memory_space<vmem>>) attributes {dimension_semantics = [#tpu.dimension_semantics<parallel>], iteration_bounds = array<i64: 1>, scalar_prefetch = 0 : i64, scratch_operands = 0 : i64, tpu.core_type = #tpu.core_type<tc>, window_params = [{transform_indices = @transform_0, window_bounds = array<i64: 8, 128>}, {pipeline_mode = #tpu.pipeline_mode<synchronous>, transform_indices = @transform_1, window_bounds = array<i64: 136, 128>}, {pipeline_mode = #tpu.pipeline_mode<synchronous>, transform_indices = @transform_2, window_bounds = array<i64: 136, 128>}, {transform_indices = @transform_3, window_bounds = array<i64: 8, 128>}, {transform_indices = @transform_4, window_bounds = array<i64: 8, 128>}]} {
    %c0 = arith.constant 0 : index
    %c0_0 = arith.constant 0 : index
    %0 = vector.load %arg1[%c0, %c0_0] : memref<8x128xbf16, #tpu.memory_space<vmem>>, vector<8x128xbf16>
    %c0_1 = arith.constant 0 : index
    %c0_2 = arith.constant 0 : index
    %1 = vector.load %arg2[%c0_1, %c0_2] : memref<136x128xbf16, #tpu.memory_space<vmem>>, vector<128x128xbf16>
    %c128 = arith.constant 128 : index
    %c0_3 = arith.constant 0 : index
    %2 = vector.load %arg2[%c128, %c0_3] : memref<136x128xbf16, #tpu.memory_space<vmem>>, vector<1x128xbf16>
    %3 = arith.extf %2 : vector<1x128xbf16> to vector<1x128xf32>
    %c0_4 = arith.constant 0 : index
    %c0_5 = arith.constant 0 : index
    %4 = vector.load %arg3[%c0_4, %c0_5] : memref<136x128xbf16, #tpu.memory_space<vmem>>, vector<128x128xbf16>
    %c128_6 = arith.constant 128 : index
    %c0_7 = arith.constant 0 : index
    %5 = vector.load %arg3[%c128_6, %c0_7] : memref<136x128xbf16, #tpu.memory_space<vmem>>, vector<1x128xbf16>
    %6 = arith.extf %5 : vector<1x128xbf16> to vector<1x128xf32>
    %cst = arith.constant dense<0.000000e+00> : vector<8x128xf32>
    %7 = tpu.matmul %0, %1, %cst {dimension_numbers = #tpu.dot_dimension_numbers<[1], [0], [0], [1], [0, 0, 1, 1], [], []>} : vector<8x128xbf16>, vector<128x128xbf16>, vector<8x128xf32> -> vector<8x128xf32>
    %8 = vector.broadcast %3 : vector<1x128xf32> to vector<8x128xf32>
    %9 = arith.addf %7, %8 : vector<8x128xf32>
    %c0_8 = arith.constant 0 : index
    %c0_9 = arith.constant 0 : index
    %10 = vector.load %arg4[%c0_8, %c0_9] : memref<8x128xf32, #tpu.memory_space<vmem>>, vector<8x128xf32>
    tpu.vector_store %arg4[%c0_8, %c0_9], %9 {strides = array<i32>} : memref<8x128xf32, #tpu.memory_space<vmem>>, vector<8x128xf32>,
    %11 = arith.truncf %9 : vector<8x128xf32> to vector<8x128xbf16>
    %cst_10 = arith.constant dense<0.000000e+00> : vector<8x128xf32>
    %12 = tpu.matmul %11, %4, %cst_10 {dimension_numbers = #tpu.dot_dimension_numbers<[1], [0], [0], [1], [0, 0, 1, 1], [], []>} : vector<8x128xbf16>, vector<128x128xbf16>, vector<8x128xf32> -> vector<8x128xf32>
    %13 = vector.broadcast %6 : vector<1x128xf32> to vector<8x128xf32>
    %14 = arith.addf %12, %13 : vector<8x128xf32>
    %c0_11 = arith.constant 0 : index
    %c0_12 = arith.constant 0 : index
    %15 = vector.load %arg5[%c0_11, %c0_12] : memref<8x128xf32, #tpu.memory_space<vmem>>, vector<8x128xf32>
    tpu.vector_store %arg5[%c0_11, %c0_12], %14 {strides = array<i32>} : memref<8x128xf32, #tpu.memory_space<vmem>>, vector<8x128xf32>,
    return
  }
  func.func @transform_0(%arg0: i32) -> (i32, i32) {
    %c0_i32 = arith.constant 0 : i32
    %c0_i32_0 = arith.constant 0 : i32
    return %arg0, %c0_i32 : i32, i32
  }
  func.func @transform_1(%arg0: i32) -> (i32, i32) {
    %c0_i32 = arith.constant 0 : i32
    %c0_i32_0 = arith.constant 0 : i32
    %c0_i32_1 = arith.constant 0 : i32
    return %c0_i32, %c0_i32_0 : i32, i32
  }
  func.func @transform_2(%arg0: i32) -> (i32, i32) {
    %c0_i32 = arith.constant 0 : i32
    %c0_i32_0 = arith.constant 0 : i32
    %c0_i32_1 = arith.constant 0 : i32
    return %c0_i32, %c0_i32_0 : i32, i32
  }
  func.func @transform_3(%arg0: i32) -> (i32, i32) {
    %c0_i32 = arith.constant 0 : i32
    %c0_i32_0 = arith.constant 0 : i32
    return %arg0, %c0_i32 : i32, i32
  }
  func.func @transform_4(%arg0: i32) -> (i32, i32) {
    %c0_i32 = arith.constant 0 : i32
    %c0_i32_0 = arith.constant 0 : i32
    return %arg0, %c0_i32 : i32, i32
  }
}

</mosaic_0001>

<bundles_post_ra>
// kernel: tpu_custom_call.1
= control target key start
LH: loop header
LB: loop body
LE: loop exit
PB: predicated region body
PF: predicated region fallthrough
CT: control target
= control target key end

     0   :  { %10 = vsyncpa [#allocation3], 0  ;;  %s523_s0 = inlined_call_operand.hbm [shape: bf16[8,128], index: 0, kind: input, shape index: {}]   ;;  %s524_s1 = inlined_call_operand.hbm [shape: bf16[136,128], index: 1, kind: input, shape index: {}]   ;;  %s525_s2 = inlined_call_operand.hbm [shape: bf16[136,128], index: 2, kind: input, shape index: {}]   ;;  %s526_s3 = inlined_call_operand.hbm [shape: f32[8,128], index: 3, kind: output, shape index: {0}]   ;;  %s527_s4 = inlined_call_operand.hbm [shape: f32[8,128], index: 4, kind: output, shape index: {1}]  }
   0x1   :  { %11 = vsyncpa [#allocation6], 0 }
   0x2   :  { %12 = vsyncpa [#allocation4], 0  ;;  %s29_s17 = sshll.u32 %s524_s1, 4  ;;  %s30_s17 = int_to_ptr.hbm [resolvable:$true] %s29_s17 }
   0x3   :  { %13 = vsyncpa [#allocation10], 0  ;;  %s476_s18 = smov [#allocation5]   ;;  %s19_s22 = sshll.u32 %s523_s0, 4  ;;  %s20_s22 = int_to_ptr.hbm [resolvable:$true] %s19_s22 }
   0x4   :  { %s31_s19 = sshll.u32 %s476_s18, 4  ;;  %s477_s23 = smov 64   ;;  %s32_s19 = int_to_ptr.vmem [resolvable:$true] %s31_s19 }
   0x5   :  { %s478_s24 = smov 4   ;;  %s479_s25 = smov [#allocation2]  }
   0x6   :  { %37 = dma.hbm_to_vmem [thread:$0]  %s30_s17, 1088, %s32_s19, [#allocation6], %s477_s23, %s477_s23, %s478_s24  }
   0x7   :  { %s21_s26 = sshll.u32 %s479_s25, 4  ;;  %s42_s29 = sshll.u32 %s525_s2, 4  ;;  %s22_s26 = int_to_ptr.vmem [resolvable:$true] %s21_s26  ;;  %s43_s29 = int_to_ptr.hbm [resolvable:$true] %s42_s29 }
   0x8   :  { %24 = dma.hbm_to_vmem [thread:$0]  %s20_s22, 64, %s22_s26, [#allocation3]  }
   0x9   :  { %s480_s1 = smov [#allocation7]  }
   0xa   :  { %s44_s30 = sshll.u32 %s480_s1, 4  ;;  %s45_s30 = int_to_ptr.vmem [resolvable:$true] %s44_s30 }
   0xb   :  { %50 = dma.hbm_to_vmem [thread:$0]  %s43_s29, 1088, %s45_s30, [#allocation6], %s477_s23, %s477_s23, %s478_s24  }
   0xc   :  { %468 = dma.done.wait [#allocation3], 64  }
   0xd   :  { %469 = vsyncadd [#allocation3], 4294967232 }
   0xe   :  { %470 = dma.done.wait [#allocation6], 2176  }
   0xf   :  { %471 = vsyncadd [#allocation6], 4294965120  ;;  %v332_v0 = vld [vmem:[#allocation5 + $0x38] sm:$0xff]  ;;  %v331_v1 = vld [vmem:[#allocation5 + $0x30] sm:$0xff]  ;;  %s481_s0 = smov [#allocation8]   ;;  %s234_s7 = sshll.u32 %s526_s3, 4  ;;  %s235_s7 = int_to_ptr.hbm [resolvable:$true] %s234_s7 }
  0x10   :  { %149 = vmatpush.bf16.msra.mxu0 %v332_v0  ;;  %v340_v2 = vld [vmem:[#allocation7 + $0x38] sm:$0xff]  ;;  %v339_v3 = vld [vmem:[#allocation7 + $0x30] sm:$0xff]  ;;  %v330_v4 = vld [vmem:[#allocation5 + $0x28] sm:$0xff]  ;;  %s232_s2 = sshll.u32 %s481_s0, 4  ;;  %s482_s8 = smov [#allocation9]   ;;  %s233_s2 = int_to_ptr.vmem [resolvable:$true] %s232_s2 }
  0x11   :  { %213 = vmatpush.bf16.msra.mxu1 %v340_v2  ;;  %v338_v5 = vld [vmem:[#allocation7 + $0x28] sm:$0xff]  ;;  %v329_v6 = vld [vmem:[#allocation5 + $0x20] sm:$0xff]  ;;  %v328_v8 = vld [vmem:[#allocation5 + $0x18] sm:$0xff]  ;;  %s243_s9 = sshll.u32 %s482_s8, 4  ;;  %s245_s12 = sshll.u32 %s527_s4, 4  ;;  %s244_s9 = int_to_ptr.vmem [resolvable:$true] %s243_s9  ;;  %s246_s12 = int_to_ptr.hbm [resolvable:$true] %s245_s12 }
  0x12   :  { %v337_v7 = vld [vmem:[#allocation7 + $0x20] sm:$0xff]  ;;  %v336_v9 = vld [vmem:[#allocation7 + $0x18] sm:$0xff]  ;;  %v327_v10 = vld [vmem:[#allocation5 + $0x10] sm:$0xff] }
  0x13   :  { %v335_v11 = vld [vmem:[#allocation7 + $0x10] sm:$0xff]  ;;  %v326_v12 = vld [vmem:[#allocation5 + $0x8] sm:$0xff]  ;;  %v325_v14 = vld [vmem:[#allocation5] sm:$0xff] }
  0x14   :  { %150 = vmatpush.bf16.msra.mxu0 %v331_v1  ;;  %v334_v13 = vld [vmem:[#allocation7 + $0x8] sm:$0xff]  ;;  %v63_v15 = vld [vmem:[#allocation2] sm:$0xf]  ;;  %v333_v16 = vld [vmem:[#allocation7] sm:$0xff] }
  0x15   :  { %214 = vmatpush.bf16.msra.mxu1 %v339_v3  ;;  %v80_v17 = vld [vmem:[#allocation5 + $0x40] sm:$0x1]  ;;  %v98_v24 = vld [vmem:[#allocation7 + $0x40] sm:$0x1] }
  0x16   :  { %v81_v18 = vunpack.c.l.bf16 %v80_v17  ;;  %v99_v25 = vunpack.c.l.bf16 %v98_v24 }
  0x18   :  { %151 = vmatpush.bf16.msra.mxu0 %v330_v4  ;;  %v100_v19 = vperm.slane %v81_v18, 0  ;;  %v164_v26 = vperm.slane %v99_v25, 0 }
  0x19   :  { %215 = vmatpush.bf16.msra.mxu1 %v338_v5 }
  0x1c   :  { %152 = vmatpush.bf16.msra.mxu0 %v329_v6 }
  0x1d   :  { %216 = vmatpush.bf16.msra.mxu1 %v337_v7 }
  0x20   :  { %153 = vmatpush.bf16.msra.mxu0 %v328_v8 }
  0x21   :  { %217 = vmatpush.bf16.msra.mxu1 %v336_v9 }
  0x24   :  { %154 = vmatpush.bf16.msra.mxu0 %v327_v10 }
  0x25   :  { %218 = vmatpush.bf16.msra.mxu1 %v335_v11 }
  0x28   :  { %155 = vmatpush.bf16.msra.mxu0 %v326_v12 }
  0x29   :  { %219 = vmatpush.bf16.msra.mxu1 %v334_v13 }
  0x2c   :  { %156 = vmatpush.bf16.msra.mxu0 %v325_v14 }
  0x2d   :  { %220 = vmatpush.bf16.msra.mxu1 %v333_v16 }
  0x2f   :  { %157 = vmatmul.bf16.vlgmr.msra.gmra.mxu0 %v63_v15 }
  0xac   :  { %v158_v20 = vpop.f32.mrf.mxu0 }
  0xad   :  { %v159_v21 = vadd.f32 %v158_v20, %v100_v19 }
  0xaf   :  { %162 = vst [vmem:[#allocation8] sm:$0xff] %v159_v21  ;;  %v163_v22 = vpack.c.bf16 %v159_v21, %v159_v21 }
  0xb0   :  { %237 = dma.vmem_to_hbm [thread:$0]  %s233_s2, 128, %s235_s7, [#allocation4]  }
  0xb1   :  { %221 = vmatmul.bf16.vlgmr.msra.gmra.mxu1 %v163_v22 }
  0xb4   :  { %v160_v23 = vpop.f32.mrf.mxu0 }
 0x12e   :  { %v222_v27 = vpop.f32.mrf.mxu1 }
 0x12f   :  { %v223_v28 = vadd.f32 %v222_v27, %v164_v26 }
 0x131   :  { %226 = vst [vmem:[#allocation9] sm:$0xff] %v223_v28 }
 0x132   :  { %248 = dma.vmem_to_hbm [thread:$0]  %s244_s9, 128, %s246_s12, [#allocation10]  }
 0x136   :  { %v224_v29 = vpop.f32.mrf.mxu1 }
 0x137   :  { %472 = dma.done.wait [#allocation4], 128  }
 0x138   :  { %473 = vsyncadd [#allocation4], 4294967168 }
 0x139   :  { %474 = dma.done.wait [#allocation10], 128  }
 0x13a   :  { %475 = vsyncadd [#allocation10], 4294967168 }
 0x13b   :  { %257 = vsyncpa [#allocation3], 1 }
 0x13c   :  { %258 = vsyncpa [#allocation6], 1 }
 0x13d   :  { %259 = vsyncpa [#allocation4], 1 }
 0x13e   :  { %260 = vsyncpa [#allocation10], 1 }

</bundles_post_ra>
